<compile_context>
chip_gen: v7x
topology: tpu7x:2x2x1
jax: 0.10.0
libtpu: 0.0.40
codegen_flags: <defaults>
</compile_context>

<pallas_src>
import functools
import math

import jax
import jax.numpy as jnp
from jax.experimental import pallas as pl
from jax.experimental.pallas import tpu as pltpu


D_IN, D_H1, D_H2, D_OUT = 8, 64, 128, 256


# ----------------------------------------------------------------------------
# Fused MLP kernel: 3 x (bf16 matmul + shift + ReLU) on one batch tile.
# x / w refs arrive already in bf16; BN scale is pre-folded into the weights,
# so the f32 epilogue is just add-shift + ReLU.
# ----------------------------------------------------------------------------
def _mlp_kernel(x_ref, w1_ref, b1_ref, w2_ref, b2_ref, w3_ref, b3_ref, o_ref):
    # Layer 1: Linear(8->64) [BN-scaled weights] + shift + ReLU
    h = jnp.dot(x_ref[...], w1_ref[...], preferred_element_type=jnp.float32)
    h = jnp.maximum(h + b1_ref[...], 0.0)

    # Layer 2: Linear(64->128) + shift + ReLU
    h = jnp.dot(h.astype(jnp.bfloat16), w2_ref[...],
                preferred_element_type=jnp.float32)
    h = jnp.maximum(h + b2_ref[...], 0.0)

    # Layer 3: Linear(128->256) + shift + ReLU
    h = jnp.dot(h.astype(jnp.bfloat16), w3_ref[...],
                preferred_element_type=jnp.float32)
    h = jnp.maximum(h + b3_ref[...], 0.0)

    o_ref[...] = h.astype(o_ref.dtype)


# ----------------------------------------------------------------------------
# Wrapper: batch tiling, padding, BN fold + bf16 cast, BlockSpecs
# ----------------------------------------------------------------------------
def mlp_forward(params, x, *, tm=512, out_dtype=jnp.float32):
    """x: (B, 8) float32 -> (B, 256) out_dtype (f32 default)."""
    B = x.shape[0]

    # Batch tile: multiple of 8 sublanes.
    tm = max(8, (int(tm) // 8) * 8)
    if B <= tm:
        # Keep >= 2 grid steps so the "parallel" batch axis can shard across
        # v7x's two TensorCores (harmless on single-core v5e/v6e).
        tm = max(8, ((pl.cdiv(B, 2) + 7) // 8) * 8)
    b_pad = pl.cdiv(B, tm) * tm
    grid = (b_pad // tm,)

    # Cast x to bf16 ONCE outside the kernel (MXU sees bf16 either way).
    x = x.astype(jnp.bfloat16)
    if b_pad != B:
        x = jnp.pad(x, ((0, b_pad - B), (0, 0)))

    # Fold BN scale into the weights in f32 (exact), then cast to bf16.
    def fold(p):
        w_folded = (p["w"] * p["scale"]).astype(jnp.bfloat16)
        return w_folded, p["shift"]

    w1, s1 = fold(params["l1"])
    w2, s2 = fold(params["l2"])
    w3, s3 = fold(params["l3"])

    row_map = lambda i: (i, 0)     # tiles over the batch dimension
    fixed_map = lambda i: (0, 0)   # resident blocks (weights / shifts)

    def resident(shape):
        # Constant-index blocks need no double buffering: DMA'd once,
        # resident in VMEM for the whole grid.
        return pl.BlockSpec(shape, fixed_map, pipeline_mode=pl.Buffered(1))

    weight_bytes = sum(int(a.size) * a.dtype.itemsize
                       for a in (w1, s1, w2, s2, w3, s3))
    out_itemsize = jnp.dtype(out_dtype).itemsize
    bytes_accessed = b_pad * (D_IN * 2 + D_OUT * out_itemsize) + weight_bytes
    flops = 2 * b_pad * (D_IN * D_H1 + D_H1 * D_H2 + D_H2 * D_OUT)

    out = pl.pallas_call(
        _mlp_kernel,
        out_shape=jax.ShapeDtypeStruct((b_pad, D_OUT), out_dtype),
        grid=grid,
        in_specs=[
            pl.BlockSpec((tm, D_IN), row_map),   # x tile (pipelined, bf16)
            resident((D_IN, D_H1)),              # w1 (bf16, BN-folded)
            resident((1, D_H1)),                 # shift1 (f32)
            resident((D_H1, D_H2)),              # w2
            resident((1, D_H2)),                 # shift2
            resident((D_H2, D_OUT)),             # w3
            resident((1, D_OUT)),                # shift3
        ],
        out_specs=pl.BlockSpec((tm, D_OUT), row_map),
        compiler_params=pltpu.CompilerParams(
            dimension_semantics=("parallel",),
            vmem_limit_bytes=32 * 1024 * 1024,
        ),
        cost_estimate=pl.CostEstimate(
            flops=flops, transcendentals=0, bytes_accessed=bytes_accessed),
    )(x, w1, s1, w2, s2, w3, s3)

    return out[:B]


# ----------------------------------------------------------------------------
# Deterministic parameter construction (PyTorch-like init, BN in inference mode)
# ----------------------------------------------------------------------------
def make_linear_bn(key, d_in, d_out, eps=1e-5):
    kw, kb, kg, kbeta = jax.random.split(key, 4)
    bound = 1.0 / math.sqrt(d_in)
    w = jax.random.uniform(kw, (d_in, d_out), jnp.float32, -bound, bound)
    b = jax.random.uniform(kb, (d_out,), jnp.float32, -bound, bound)
    gamma = 1.0 + 0.1 * jax.random.normal(kg, (d_out,), jnp.float32)
    beta = 0.1 * jax.random.normal(kbeta, (d_out,), jnp.float32)
    running_mean = jnp.zeros((d_out,), jnp.float32)
    running_var = jnp.ones((d_out,), jnp.float32)
    # BN (inference) folded with the Linear bias:
    #   y = gamma*(xW + b - mean)/sqrt(var+eps) + beta = (xW)*scale + shift
    scale = gamma / jnp.sqrt(running_var + eps)
    shift = (b - running_mean) * scale + beta
    return {"w": w,
            "scale": scale.reshape(1, d_out),
            "shift": shift.reshape(1, d_out)}


def init_params(key):
    k1, k2, k3 = jax.random.split(key, 3)
    return {
        "l1": make_linear_bn(k1, D_IN, D_H1),
        "l2": make_linear_bn(k2, D_H1, D_H2),
        "l3": make_linear_bn(k3, D_H2, D_OUT),
    }


def reference(params, x):
    """Pure-JAX f32 reference of NN.forward (inference-mode BN, unfolded)."""
    h = x.astype(jnp.float32)
    for name in ("l1", "l2", "l3"):
        p = params[name]
        h = jnp.maximum((h @ p["w"]) * p["scale"] + p["shift"], 0.0)
    return h


# ----------------------------------------------------------------------------
if __name__ == "__main__":
    key = jax.random.PRNGKey(0)
    kp, kx = jax.random.split(key)
    params = init_params(kp)

    B = 256                                  # small batch, input features = 8
    x = jax.random.normal(kx, (B, D_IN), jnp.float32)

    fwd = jax.jit(functools.partial(mlp_forward, tm=512))
    out = jax.block_until_ready(fwd(params, x))

    assert out.shape == (B, D_OUT), out.shape
    assert bool(jnp.all(jnp.isfinite(out)))

    # Loose tolerance: kernel uses bf16 MXU operands, reference is full f32.
    ref = reference(params, x)
    err = float(jnp.max(jnp.abs(out - ref)))
    ref_norm = float(jnp.max(jnp.abs(ref))) + 1e-6
    assert err <= 0.05 * ref_norm, (err, ref_norm)

    print("KERNEL_OK")
</pallas_src>

<mosaic_0001>
module attributes {stable_mosaic.version = 11 : i64} {
  func.func @_mlp_kernel(%arg0: i32, %arg1: memref<128x8xbf16, #tpu.memory_space<vmem>>, %arg2: memref<8x64xbf16, #tpu.memory_space<vmem>>, %arg3: memref<1x64xf32, #tpu.memory_space<vmem>>, %arg4: memref<64x128xbf16, #tpu.memory_space<vmem>>, %arg5: memref<1x128xf32, #tpu.memory_space<vmem>>, %arg6: memref<128x256xbf16, #tpu.memory_space<vmem>>, %arg7: memref<1x256xf32, #tpu.memory_space<vmem>>, %arg8: memref<128x256xf32, #tpu.memory_space<vmem>>) attributes {dimension_semantics = [#tpu.dimension_semantics<parallel>], iteration_bounds = array<i64: 2>, scalar_prefetch = 0 : i64, scratch_operands = 0 : i64, tpu.core_type = #tpu.core_type<tc>, window_params = [{transform_indices = @transform_0, window_bounds = array<i64: 128, 8>}, {pipeline_mode = #tpu.pipeline_mode<synchronous>, transform_indices = @transform_1, window_bounds = array<i64: 8, 64>}, {pipeline_mode = #tpu.pipeline_mode<synchronous>, transform_indices = @transform_2, window_bounds = array<i64: 1, 64>}, {pipeline_mode = #tpu.pipeline_mode<synchronous>, transform_indices = @transform_3, window_bounds = array<i64: 64, 128>}, {pipeline_mode = #tpu.pipeline_mode<synchronous>, transform_indices = @transform_4, window_bounds = array<i64: 1, 128>}, {pipeline_mode = #tpu.pipeline_mode<synchronous>, transform_indices = @transform_5, window_bounds = array<i64: 128, 256>}, {pipeline_mode = #tpu.pipeline_mode<synchronous>, transform_indices = @transform_6, window_bounds = array<i64: 1, 256>}, {transform_indices = @transform_7, window_bounds = array<i64: 128, 256>}]} {
    %c0 = arith.constant 0 : index
    %c0_0 = arith.constant 0 : index
    %0 = vector.load %arg1[%c0, %c0_0] : memref<128x8xbf16, #tpu.memory_space<vmem>>, vector<128x8xbf16>
    %c0_1 = arith.constant 0 : index
    %c0_2 = arith.constant 0 : index
    %1 = vector.load %arg2[%c0_1, %c0_2] : memref<8x64xbf16, #tpu.memory_space<vmem>>, vector<8x64xbf16>
    %cst = arith.constant dense<0.000000e+00> : vector<128x64xf32>
    %2 = tpu.matmul %0, %1, %cst {dimension_numbers = #tpu.dot_dimension_numbers<[1], [0], [0], [1], [0, 0, 1, 1], [], []>} : vector<128x8xbf16>, vector<8x64xbf16>, vector<128x64xf32> -> vector<128x64xf32>
    %c0_3 = arith.constant 0 : index
    %c0_4 = arith.constant 0 : index
    %3 = vector.load %arg3[%c0_3, %c0_4] : memref<1x64xf32, #tpu.memory_space<vmem>>, vector<1x64xf32>
    %4 = vector.broadcast %3 : vector<1x64xf32> to vector<128x64xf32>
    %5 = arith.addf %2, %4 : vector<128x64xf32>
    %cst_5 = arith.constant 0.000000e+00 : f32
    %6 = vector.broadcast %cst_5 : f32 to vector<128x64xf32>
    %7 = arith.maximumf %5, %6 : vector<128x64xf32>
    %8 = arith.truncf %7 : vector<128x64xf32> to vector<128x64xbf16>
    %c0_6 = arith.constant 0 : index
    %c0_7 = arith.constant 0 : index
    %9 = vector.load %arg4[%c0_6, %c0_7] : memref<64x128xbf16, #tpu.memory_space<vmem>>, vector<64x128xbf16>
    %cst_8 = arith.constant dense<0.000000e+00> : vector<128x128xf32>
    %10 = tpu.matmul %8, %9, %cst_8 {dimension_numbers = #tpu.dot_dimension_numbers<[1], [0], [0], [1], [0, 0, 1, 1], [], []>} : vector<128x64xbf16>, vector<64x128xbf16>, vector<128x128xf32> -> vector<128x128xf32>
    %c0_9 = arith.constant 0 : index
    %c0_10 = arith.constant 0 : index
    %11 = vector.load %arg5[%c0_9, %c0_10] : memref<1x128xf32, #tpu.memory_space<vmem>>, vector<1x128xf32>
    %12 = vector.broadcast %11 : vector<1x128xf32> to vector<128x128xf32>
    %13 = arith.addf %10, %12 : vector<128x128xf32>
    %cst_11 = arith.constant 0.000000e+00 : f32
    %14 = vector.broadcast %cst_11 : f32 to vector<128x128xf32>
    %15 = arith.maximumf %13, %14 : vector<128x128xf32>
    %16 = arith.truncf %15 : vector<128x128xf32> to vector<128x128xbf16>
    %c0_12 = arith.constant 0 : index
    %c0_13 = arith.constant 0 : index
    %17 = vector.load %arg6[%c0_12, %c0_13] : memref<128x256xbf16, #tpu.memory_space<vmem>>, vector<128x256xbf16>
    %cst_14 = arith.constant dense<0.000000e+00> : vector<128x256xf32>
    %18 = tpu.matmul %16, %17, %cst_14 {dimension_numbers = #tpu.dot_dimension_numbers<[1], [0], [0], [1], [0, 0, 1, 1], [], []>} : vector<128x128xbf16>, vector<128x256xbf16>, vector<128x256xf32> -> vector<128x256xf32>
    %c0_15 = arith.constant 0 : index
    %c0_16 = arith.constant 0 : index
    %19 = vector.load %arg7[%c0_15, %c0_16] : memref<1x256xf32, #tpu.memory_space<vmem>>, vector<1x256xf32>
    %20 = vector.broadcast %19 : vector<1x256xf32> to vector<128x256xf32>
    %21 = arith.addf %18, %20 : vector<128x256xf32>
    %cst_17 = arith.constant 0.000000e+00 : f32
    %22 = vector.broadcast %cst_17 : f32 to vector<128x256xf32>
    %23 = arith.maximumf %21, %22 : vector<128x256xf32>
    %c0_18 = arith.constant 0 : index
    %c0_19 = arith.constant 0 : index
    %24 = vector.load %arg8[%c0_18, %c0_19] : memref<128x256xf32, #tpu.memory_space<vmem>>, vector<128x256xf32>
    tpu.vector_store %arg8[%c0_18, %c0_19], %23 {strides = array<i32>} : memref<128x256xf32, #tpu.memory_space<vmem>>, vector<128x256xf32>,
    return
  }
  func.func @transform_0(%arg0: i32) -> (i32, i32) {
    %c0_i32 = arith.constant 0 : i32
    %c0_i32_0 = arith.constant 0 : i32
    return %arg0, %c0_i32 : i32, i32
  }
  func.func @transform_1(%arg0: i32) -> (i32, i32) {
    %c0_i32 = arith.constant 0 : i32
    %c0_i32_0 = arith.constant 0 : i32
    %c0_i32_1 = arith.constant 0 : i32
    return %c0_i32, %c0_i32_0 : i32, i32
  }
  func.func @transform_2(%arg0: i32) -> (i32, i32) {
    %c0_i32 = arith.constant 0 : i32
    %c0_i32_0 = arith.constant 0 : i32
    %c0_i32_1 = arith.constant 0 : i32
    return %c0_i32, %c0_i32_0 : i32, i32
  }
  func.func @transform_3(%arg0: i32) -> (i32, i32) {
    %c0_i32 = arith.constant 0 : i32
    %c0_i32_0 = arith.constant 0 : i32
    %c0_i32_1 = arith.constant 0 : i32
    return %c0_i32, %c0_i32_0 : i32, i32
  }
  func.func @transform_4(%arg0: i32) -> (i32, i32) {
    %c0_i32 = arith.constant 0 : i32
    %c0_i32_0 = arith.constant 0 : i32
    %c0_i32_1 = arith.constant 0 : i32
    return %c0_i32, %c0_i32_0 : i32, i32
  }
  func.func @transform_5(%arg0: i32) -> (i32, i32) {
    %c0_i32 = arith.constant 0 : i32
    %c0_i32_0 = arith.constant 0 : i32
    %c0_i32_1 = arith.constant 0 : i32
    return %c0_i32, %c0_i32_0 : i32, i32
  }
  func.func @transform_6(%arg0: i32) -> (i32, i32) {
    %c0_i32 = arith.constant 0 : i32
    %c0_i32_0 = arith.constant 0 : i32
    %c0_i32_1 = arith.constant 0 : i32
    return %c0_i32, %c0_i32_0 : i32, i32
  }
  func.func @transform_7(%arg0: i32) -> (i32, i32) {
    %c0_i32 = arith.constant 0 : i32
    %c0_i32_0 = arith.constant 0 : i32
    return %arg0, %c0_i32 : i32, i32
  }
}

</mosaic_0001>

<bundles_post_ra>
// kernel: mlp_forward.1
= control target key start
LH: loop header
LB: loop body
LE: loop exit
PB: predicated region body
PF: predicated region fallthrough
CT: control target
= control target key end

     0   :  { %12 = vsyncpa [#allocation3], 0  ;;  %s1680_s0 = inlined_call_operand.vmem [shape: bf16[256,8], index: 0, kind: input, shape index: {}]   ;;  %s1681_s1 = inlined_call_operand.vmem [shape: bf16[8,64], index: 1, kind: input, shape index: {}]   ;;  %s1682_s2 = inlined_call_operand.vmem [shape: f32[1,64], index: 2, kind: input, shape index: {}]   ;;  %s1683_s3 = inlined_call_operand.vmem [shape: bf16[64,128], index: 3, kind: input, shape index: {}]   ;;  %s1684_s4 = inlined_call_operand.vmem [shape: f32[1,128], index: 4, kind: input, shape index: {}]   ;;  %s1685_s5 = inlined_call_operand.vmem [shape: bf16[128,256], index: 5, kind: input, shape index: {}]   ;;  %s1686_s6 = inlined_call_operand.vmem [shape: f32[1,256], index: 6, kind: input, shape index: {}]   ;;  %s1687_s7 = inlined_call_operand.hbm [shape: f32[256,256], index: 7, kind: output, shape index: {}]  }
   0x1   :  { %14 = vsyncpa [#allocation3 + $0x1], 0  ;;  %s1369_s24 = smov 0   ;;  %s1371_s25 = smov 0  }
   0x2   :  { %s1373_s26 = smov 0   ;;  %s1375_s27 = smov 0  }
   0x3 LB: > { %s1390_s28 = sadd.s32 4294967295, %s1323_s27   ;;  %s1042_s29 = sadd.s32 4294967294, %s1323_s27   ;;  %s1323_s27 = sphi %s1375_s27, %s1693_s27   ;;  %s1319_s26 = sphi %s1373_s26, %s1692_s26   ;;  %s1315_s25 = sphi %s1371_s25, %s1691_s25   ;;  %s1311_s24 = sphi %s1369_s24, %s1690_s24  }
   0x4   : > { %s1394_s30 = sadd.s32 1, %s1323_s27   ;;  %s179_s8 = sadd.s32 1, %s1319_s26 }
   0x5   : > { %s176_s9 = ssub.s32 %s1323_s27, %s1394_s30  ;;  %p189_p0 = scmp.ne.s32.totalorder %s1319_s26, %s1315_s25 }
   0x6   : > { %p177_p1 = scmp.eq.s32.totalorder %s176_s9, 0  ;;  %p190_p2 = scmp.eq.s32.totalorder %s1390_s28, 1 }
   0x7   : > { %p195_p3 = scmp.ne.s32.totalorder %s1315_s25, %s1311_s24  ;;  %p196_p4 = scmp.eq.s32.totalorder %s1042_s29, 1 }
   0x8   : > { %s1405_s10 = scalar_select %p177_p1, %s1319_s26, %s179_s8  }
   0x9   : > { %p1407_p5 = por %p190_p2, %p189_p0  ;;  %p1411_p6 = por %p196_p4, %p195_p3 }
   0xa   : > { %p1045_p7 = scmp.ge.s32.totalorder %s1323_s27, 1  ;;  %p241_p8 = scmp.lt.s32.totalorder %s1323_s27, 3 }
   0xc   : > { %p242_p9 = pnand %p1045_p7, %p241_p8 }
   0xd   : > { %v297_v0 = vld [vmem:[%s1681_s1] sm:$0xf] (!%p242_p9)  ;;  %vm370_vm0 = vcmask (!%p242_p9), 1043456   ;;  %s1047_s15 = sshll.u32 (!%p242_p9), %s1390_s28, 4  ;;  %v1234_v3 = vld [vmem:[%s1683_s3 + $0x8] sm:$0xff] (!%p242_p9)   ;;  %vm345_vm1 = vcmask (!%p242_p9), 64512  }
   0xe   : > { %245 = sbr.rel (%p242_p9) target bundleno = 735 (0x2df), region = 48  ;;  %v1233_v1 = vld [vmem:[%s1683_s3] sm:$0xff] (!%p242_p9)   ;;  %1182 = vmatprep.subr.msk.bf16.mxu0 (!%p242_p9), %vm370_vm0, %v297_v0  ;;  %v372_v2 = vsel (!%p242_p9), %vm370_vm0, %v297_v0, 0  ;;  %p274_p10 = scmp.lt.s32.totalorder (!%p242_p9), %s1047_s15, 31  ;;  %v1235_v12 = vld [vmem:[%s1683_s3 + $0x10] sm:$0xff] (!%p242_p9)   ;;  %v1236_v13 = vld [vmem:[%s1683_s3 + $0x18] sm:$0xff] (!%p242_p9)  }
   0xf   : > { %1125 = vmatpush3.bf16.msra.mxu0 (!%p242_p9), %v372_v2  ;;  %1142 = vmatprep.subr.bf16.mxu1 (!%p242_p9), %v1233_v1  ;;  %v1237_v14 = vld [vmem:[%s1685_s5] ss:$8 sps:$4 sm:$0xff] (!%p242_p9)   ;;  %v1239_v15 = vld [vmem:[%s1685_s5 + $0x4] ss:$8 sps:$4 sm:$0xff] (!%p242_p9)   ;;  %v1242_v16 = vld [vmem:[%s1685_s5 + $0x14] ss:$8 sps:$4 sm:$0xff] (!%p242_p9)  }
  0x10   : > { %1143 = vmatpush3.bf16.msra.mxu1 (!%p242_p9), %v1233_v1  ;;  %788 = vmatprep.subr.bf16.mxu0 (!%p242_p9), %v1239_v15  ;;  %v1240_v17 = vld [vmem:[%s1685_s5 + $0x10] ss:$8 sps:$4 sm:$0xff] (!%p242_p9)   ;;  %v1245_v18 = vld [vmem:[%s1685_s5 + $0x24] ss:$8 sps:$4 sm:$0xff] (!%p242_p9)   ;;  %v1243_v19 = vld [vmem:[%s1685_s5 + $0x20] ss:$8 sps:$4 sm:$0xff] (!%p242_p9)  }
  0x11   : > { %1144 = vmatprep.subr.bf16.mxu1 (!%p242_p9), %v1234_v3  ;;  %v1248_v20 = vld [vmem:[%s1685_s5 + $0x34] ss:$8 sps:$4 sm:$0xff] (!%p242_p9)   ;;  %v1468_v21 = vld [vmem:[%s1685_s5 + $0x30] ss:$8 sps:$4 sm:$0xff] (!%p242_p9)   ;;  %v1473_v22 = vld [vmem:[%s1685_s5 + $0x44] ss:$8 sps:$4 sm:$0xff] (!%p242_p9)  }
  0x12   : > { %v1479_v23 = vld [vmem:[%s1685_s5 + $0x40] ss:$8 sps:$4 sm:$0xff] (!%p242_p9)   ;;  %v1485_v24 = vld [vmem:[%s1685_s5 + $0x54] ss:$8 sps:$4 sm:$0xff] (!%p242_p9)   ;;  %v1491_v25 = vld [vmem:[%s1685_s5 + $0x50] ss:$8 sps:$4 sm:$0xff] (!%p242_p9)  }
  0x13   : > { %v1498_v26 = vld [vmem:[%s1682_s2] ss:$0 sm:$0xff] (!%p242_p9)  ;;  %vm534_vm2 = vcmask (!%p242_p9), 523264   ;;  %s270_s29 = sand.u32 (!%p242_p9), 1, %s1315_s25   ;;  %s1102_s13 = sshll.u32 (!%p242_p9), %s1390_s28, 12 }
  0x14   : > { %1145 = vmatpush3.bf16.msra.mxu1 (!%p242_p9), %v1234_v3  ;;  %s1046_s8 = sshll.u32 (!%p242_p9), %s270_s29, 8  ;;  %s1627_s16 = scalar_lea.hbm (!%p242_p9), %s1687_s7, %s1102_s13 }
  0x15   : > { %s1695_s15 = smov (!%p274_p10, %s1047_s15), 31  ;;  %1146 = vmatprep.subr.bf16.mxu1 %v1235_v12  ;;  %s1566_s9 = scalar_lea.vmem [#allocation2], %s1046_s8 }
  0x16   : > { %s1048_s20 = sshll.u32 %s1695_s15, 2  ;;  %s980_s14 = sshll.u32 %s1566_s9, 4  ;;  %s1629_s14 = int_to_ptr.vmem [resolvable:$true] %s980_s14 }
  0x17   : > { %s277_s23 = scalar_lea.vmem %s1680_s0, %s1048_s20  ;;  %s1639_s17 = scalar_lea.sflag [#allocation3], %s270_s29 }
  0x18   : > { %v1225_v4 = vld [vmem:[%s277_s23] sm:$0xff]   ;;  %v1226_v5 = vld [vmem:[%s277_s23 + $0x8] sm:$0xff]   ;;  %v1227_v6 = vld [vmem:[%s277_s23 + $0x10] sm:$0xff]   ;;  %1147 = vmatpush3.bf16.msra.mxu1 %v1235_v12  ;;  %s1261_s18 = scalar_lea.vmem %s1629_s14, 4096  ;;  %s1326_s19 = smov [#allocation2]  }
  0x19   : > { %1126 = vmatprep.mubr.msk.bf16.mxu0 %vm345_vm1, %v1225_v4  ;;  %v1228_v7 = vld [vmem:[%s277_s23 + $0x18] sm:$0xff]   ;;  %v1229_v8 = vld [vmem:[%s277_s23 + $0x20] sm:$0xff]   ;;  %v1230_v9 = vld [vmem:[%s277_s23 + $0x28] sm:$0xff]   ;;  %1148 = vmatprep.subr.bf16.mxu1 %v1236_v13  ;;  %p1262_p11 = scmp.ne.s32.totalorder %s1629_s14, %s1261_s18  ;;  %s1265_s20 = sshll.u32 %s1326_s19, 4  ;;  %s1266_s20 = int_to_ptr.vmem [resolvable:$false] %s1265_s20 }
  0x1a   : > { %1127 = vmatmul.mubr.msk.bf16.vlgmr.msra.gmra.mrb[0].mxu0 %vm345_vm1, %v1226_v5  ;;  %v1231_v10 = vld [vmem:[%s277_s23 + $0x30] sm:$0xff]   ;;  %v1232_v11 = vld [vmem:[%s277_s23 + $0x38] sm:$0xff]   ;;  %s1267_s21 = scalar_lea.vmem %s1266_s20, 8192  ;;  %p1268_p0 = scmp.lt.s32.totalorder %s1629_s14, %s1266_s20 }
  0x1b   : > { %1130 = vmatprep.mubr.msk.bf16.mxu0 %vm345_vm1, %v1227_v6  ;;  %789 = vmatpush1.bf16.msra.mxu0 %v1237_v14  ;;  %p1263_p12 = pnand %p1262_p11, %p1407_p5  ;;  %p1269_p1 = scmp.lt.s32.totalorder %s1267_s21, %s1261_s18 }
  0x1c   : > { %1149 = vmatpush3.bf16.msra.mxu1 %v1236_v13  ;;  %790 = vmatprep.subr.bf16.mxu0 %v1242_v16 }
  0x1d   : > { %1166 = vmatprep.subr.bf16.mxu1 %v1239_v15  ;;  %p1264_p13 = pneg %p1263_p12  ;;  %p1270_p2 = por %p1269_p1, %p1268_p0 }
  0x1f   : > { %791 = vmatpush1.bf16.msra.mxu0 %v1240_v17  ;;  %p1271_p3 = pnand %p1270_p2, %p1264_p13 }
  0x20   : > { %792 = vmatprep.subr.bf16.mxu0 %v1245_v18 }
  0x22   : > { %1131 = vmatmul.mubr.msk.bf16.gmra.mrb[4].mxu0 %vm345_vm1, %v1228_v7 }
  0x23   : > { %1134 = vmatprep.mubr.msk.bf16.mxu0 %vm345_vm1, %v1229_v8  ;;  %793 = vmatpush1.bf16.msra.mxu0 %v1243_v19 }
  0x24   : > { %794 = vmatprep.subr.bf16.mxu0 %v1248_v20 }
  0x27   : > { %795 = vmatpush1.bf16.msra.mxu0 %v1468_v21 }
  0x28   : > { %796 = vmatprep.subr.bf16.mxu0 %v1473_v22 }
  0x2a   : > { %1135 = vmatmul.mubr.msk.bf16.gmra.mrb[8].mxu0 %vm345_vm1, %v1230_v9 }
  0x2b   : > { %1138 = vmatprep.mubr.msk.bf16.mxu0 %vm345_vm1, %v1231_v10  ;;  %797 = vmatpush1.bf16.msra.mxu0 %v1479_v23 }
  0x2c   : > { %798 = vmatprep.subr.bf16.mxu0 %v1485_v24 }
  0x2f   : > { %799 = vmatpush1.bf16.msra.mxu0 %v1491_v25 }
  0x32   : > { %1139 = vmatmul.mubr.msk.bf16.gmra.mrb[12].mxu0 %vm345_vm1, %v1232_v11 }
  0xed   : > { %v1128_v27 = vpop.f32.mrb[0].mxu0 }
  0xee   : > { %v417_v28 = vadd.f32 %v1128_v27, %v1498_v26  ;;  %v408_v29 = vpop.f32.mrb[1].mxu0 }
  0xef   : > { %v409_v30 = vadd.f32 %v1498_v26, %v408_v29  ;;  %v1129_v31 = vpop.f32.mrb[2].mxu0 }
  0xf0   : > { %v420_v32 = vadd.f32 %v1129_v31, %v1498_v26  ;;  %v411_v33 = vpop.f32.mrb[3].mxu0  ;;  %v473_v35 = vmax.f32 %v417_v28, 0.0 }
  0xf1   : > { %v412_v34 = vadd.f32 %v1498_v26, %v411_v33  ;;  %v471_v37 = vmax.f32 %v409_v30, 0.0 }
  0xf2   : > { %v474_v36 = vmax.f32 %v420_v32, 0.0 }
  0xf3   : > { %v472_v38 = vmax.f32 %v412_v34, 0.0 }
  0xf4   : > { %v488_v39 = vpack.c.bf16 %v474_v36, %v473_v35 }
  0xf5   : > { %v1132_v40 = vpop.f32.mrb[4].mxu0  ;;  %v487_v41 = vpack.c.bf16 %v472_v38, %v471_v37 }
  0xf6   : > { %v433_v42 = vadd.f32 %v1132_v40, %v1498_v26  ;;  %v424_v43 = vpop.f32.mrb[5].mxu0 }
  0xf7   : > { %v425_v44 = vadd.f32 %v1498_v26, %v424_v43  ;;  %v1133_v45 = vpop.f32.mrb[6].mxu0  ;;  %1150 = vmatprep.mubr.msk.bf16.mxu1 %vm534_vm2, %v487_v41 }
  0xf8   : > { %v436_v46 = vadd.f32 %v1133_v45, %v1498_v26  ;;  %v427_v47 = vpop.f32.mrb[7].mxu0  ;;  %1151 = vmatmul.mubr.msk.bf16.vlgmr.msra.gmra.mrb[0].mxu1 %vm534_vm2, %v488_v39  ;;  %v477_v49 = vmax.f32 %v433_v42, 0.0 }
  0xf9   : > { %v428_v48 = vadd.f32 %v1498_v26, %v427_v47  ;;  %1174 = vmatpush1.bf16.msra.mxu1 %v1237_v14  ;;  %v475_v51 = vmax.f32 %v425_v44, 0.0 }
  0xfa   : > { %v478_v50 = vmax.f32 %v436_v46, 0.0  ;;  %1167 = vmatprep.subr.bf16.mxu1 %v1242_v16 }
  0xfb   : > { %v476_v52 = vmax.f32 %v428_v48, 0.0 }
  0xfc   : > { %v490_v53 = vpack.c.bf16 %v478_v50, %v477_v49 }
  0xfd   : > { %v489_v54 = vpack.c.bf16 %v476_v52, %v475_v51  ;;  %v1136_v55 = vpop.f32.mrb[8].mxu0  ;;  %1175 = vmatpush1.bf16.msra.mxu1 %v1240_v17 }
  0xfe   : > { %v449_v56 = vadd.f32 %v1136_v55, %v1498_v26  ;;  %v440_v57 = vpop.f32.mrb[9].mxu0  ;;  %1168 = vmatprep.subr.bf16.mxu1 %v1245_v18 }
  0xff   : > { %v441_v58 = vadd.f32 %v1498_v26, %v440_v57  ;;  %v1137_v59 = vpop.f32.mrb[10].mxu0  ;;  %1154 = vmatprep.mubr.msk.bf16.mxu1 %vm534_vm2, %v489_v54 }
 0x100   : > { %v452_v60 = vadd.f32 %v1137_v59, %v1498_v26  ;;  %v443_v61 = vpop.f32.mrb[11].mxu0  ;;  %1155 = vmatmul.mubr.msk.bf16.gmra.mrb[4].mxu1 %vm534_vm2, %v490_v53  ;;  %v481_v63 = vmax.f32 %v449_v56, 0.0 }
 0x101   : > { %v444_v62 = vadd.f32 %v1498_v26, %v443_v61  ;;  %1176 = vmatpush1.bf16.msra.mxu1 %v1243_v19  ;;  %v479_v1 = vmax.f32 %v441_v58, 0.0  ;;  %v1257_v19 = vld [vmem:[%s1685_s5 + $0x64] ss:$8 sps:$4 sm:$0xff]  }
 0x102   : > { %v482_v0 = vmax.f32 %v452_v60, 0.0  ;;  %1169 = vmatprep.subr.bf16.mxu1 %v1248_v20  ;;  %v1255_v20 = vld [vmem:[%s1685_s5 + $0x60] ss:$8 sps:$4 sm:$0xff]   ;;  %800 = vmatprep.subr.bf16.mxu0 %v1257_v19 }
 0x103   : > { %v480_v2 = vmax.f32 %v444_v62, 0.0  ;;  %801 = vmatpush1.bf16.msra.mxu0 %v1255_v20 }
 0x104   : > { %v492_v3 = vpack.c.bf16 %v482_v0, %v481_v63 }
 0x105   : > { %v491_v4 = vpack.c.bf16 %v480_v2, %v479_v1  ;;  %v1140_v5 = vpop.f32.mrb[12].mxu0  ;;  %1177 = vmatpush1.bf16.msra.mxu1 %v1468_v21  ;;  %v1260_v21 = vld [vmem:[%s1685_s5 + $0x74] ss:$8 sps:$4 sm:$0xff]  }
 0x106   : > { %v465_v6 = vadd.f32 %v1140_v5, %v1498_v26  ;;  %v456_v7 = vpop.f32.mrb[13].mxu0  ;;  %1170 = vmatprep.subr.bf16.mxu1 %v1473_v22  ;;  %v1258_v22 = vld [vmem:[%s1685_s5 + $0x70] ss:$8 sps:$4 sm:$0xff]   ;;  %802 = vmatprep.subr.bf16.mxu0 %v1260_v21 }
 0x107   : > { %v457_v8 = vadd.f32 %v1498_v26, %v456_v7  ;;  %v1141_v9 = vpop.f32.mrb[14].mxu0  ;;  %1158 = vmatprep.mubr.msk.bf16.mxu1 %vm534_vm2, %v491_v4  ;;  %803 = vmatpush1.bf16.msra.mxu0 %v1258_v22 }
 0x108   : > { %v468_v10 = vadd.f32 %v1141_v9, %v1498_v26  ;;  %v459_v11 = vpop.f32.mrb[15].mxu0  ;;  %1159 = vmatmul.mubr.msk.bf16.gmra.mrb[8].mxu1 %vm534_vm2, %v492_v3  ;;  %v485_v13 = vmax.f32 %v465_v6, 0.0 }
 0x109   : > { %v460_v12 = vadd.f32 %v1498_v26, %v459_v11  ;;  %1178 = vmatpush1.bf16.msra.mxu1 %v1479_v23  ;;  %v483_v15 = vmax.f32 %v457_v8, 0.0  ;;  %v1325_v23 = vmov 0  }
 0x10a   : > { %v486_v14 = vmax.f32 %v468_v10, 0.0  ;;  %1171 = vmatprep.subr.bf16.mxu1 %v1485_v24  ;;  %820 = vmatprep.mubr.bf16.mxu0 %v1325_v23  ;;  %v1066_v24 = vld [vmem:[%s1684_s4] ss:$0 sm:$0xff] }
 0x10b   : > { %v484_v16 = vmax.f32 %v460_v12, 0.0 }
 0x10c   : > { %v494_v17 = vpack.c.bf16 %v486_v14, %v485_v13 }
 0x10d   : > { %v493_v18 = vpack.c.bf16 %v484_v16, %v483_v15  ;;  %1179 = vmatpush1.bf16.msra.mxu1 %v1491_v25 }
 0x10e   : > { %1172 = vmatprep.subr.bf16.mxu1 %v1257_v19 }
 0x10f   : > { %1162 = vmatprep.mubr.msk.bf16.mxu1 %vm534_vm2, %v493_v18 }
 0x110   : > { %1163 = vmatmul.mubr.msk.bf16.gmra.mrb[12].mxu1 %vm534_vm2, %v494_v17  ;;  %v698_v17 = vlaneseq }
 0x111   : > { %1180 = vmatpush1.bf16.msra.mxu1 %v1255_v20  ;;  %870 = vmatprep.mubr.bf16.mxu1 %v1325_v23  ;;  %v696_v20 = vld [vmem:[%s1686_s6] sm:$0x3] }
 0x112   : > { %1173 = vmatprep.subr.bf16.mxu1 %v1260_v21  ;;  %v699_v18 = vshrl.u32 %v698_v17, 7 }
 0x114   : > { %v700_v19 = vsub.s32 0, %v699_v18  ;;  %v704_v21 = vsub.s32 1, %v699_v18 }
 0x115   : > { %1181 = vmatpush1.bf16.msra.mxu1 %v1258_v22 }
 0x116   : > { %v1556_v22 = vrot.slane %v696_v20, %v700_v19 }
 0x1cb   : > { %v1152_v25 = vpop.f32.mrb[0].mxu1 }
 0x1cc   : > { %v602_v26 = vadd.f32 %v1152_v25, %v1066_v24  ;;  %v593_v27 = vpop.f32.mrb[1].mxu1 }
 0x1cd   : > { %v594_v28 = vadd.f32 %v1066_v24, %v593_v27  ;;  %v1153_v29 = vpop.f32.mrb[2].mxu1 }
 0x1ce   : > { %v605_v30 = vadd.f32 %v1153_v29, %v1066_v24  ;;  %v596_v31 = vpop.f32.mrb[3].mxu1  ;;  %v658_v33 = vmax.f32 %v602_v26, 0.0 }
 0x1cf   : > { %v597_v32 = vadd.f32 %v1066_v24, %v596_v31  ;;  %v656_v35 = vmax.f32 %v594_v28, 0.0 }
 0x1d0   : > { %v659_v34 = vmax.f32 %v605_v30, 0.0 }
 0x1d1   : > { %v657_v36 = vmax.f32 %v597_v32, 0.0 }
 0x1d2   : > { %v673_v37 = vpack.c.bf16 %v659_v34, %v658_v33 }
 0x1d3   : > { %v672_v38 = vpack.c.bf16 %v657_v36, %v656_v35  ;;  %v1156_v39 = vpop.f32.mrb[4].mxu1 }
 0x1d4   : > { %v618_v40 = vadd.f32 %v1156_v39, %v1066_v24  ;;  %v609_v41 = vpop.f32.mrb[5].mxu1 }
 0x1d5   : > { %v610_v42 = vadd.f32 %v1066_v24, %v609_v41  ;;  %v1157_v43 = vpop.f32.mrb[6].mxu1  ;;  %821 = vmatmul.mubr.bf16.vlgmr.msra.gmra.mrb[16].mxu0 %v672_v38 }
 0x1d6   : > { %v621_v44 = vadd.f32 %v1157_v43, %v1066_v24  ;;  %v612_v45 = vpop.f32.mrb[7].mxu1  ;;  %830 = vmatprep.mubr.bf16.mxu0 %v1325_v23  ;;  %v662_v47 = vmax.f32 %v618_v40, 0.0 }
 0x1d7   : > { %v613_v46 = vadd.f32 %v1066_v24, %v612_v45  ;;  %v660_v49 = vmax.f32 %v610_v42, 0.0 }
 0x1d8   : > { %v663_v48 = vmax.f32 %v621_v44, 0.0 }
 0x1d9   : > { %v661_v50 = vmax.f32 %v613_v46, 0.0 }
 0x1da   : > { %v675_v51 = vpack.c.bf16 %v663_v48, %v662_v47 }
 0x1db   : > { %v674_v52 = vpack.c.bf16 %v661_v50, %v660_v49  ;;  %v1160_v53 = vpop.f32.mrb[8].mxu1 }
 0x1dc   : > { %v634_v54 = vadd.f32 %v1160_v53, %v1066_v24  ;;  %v625_v55 = vpop.f32.mrb[9].mxu1 }
 0x1dd   : > { %v626_v56 = vadd.f32 %v1066_v24, %v625_v55  ;;  %v1161_v57 = vpop.f32.mrb[10].mxu1  ;;  %831 = vmatmul.mubr.bf16.gmra.mrb[20].mxu0 %v673_v37 }
 0x1de   : > { %v637_v58 = vadd.f32 %v1161_v57, %v1066_v24  ;;  %v628_v59 = vpop.f32.mrb[11].mxu1  ;;  %840 = vmatprep.mubr.bf16.mxu0 %v1325_v23  ;;  %v666_v61 = vmax.f32 %v634_v54, 0.0 }
 0x1df   : > { %v629_v60 = vadd.f32 %v1066_v24, %v628_v59  ;;  %v664_v63 = vmax.f32 %v626_v56, 0.0 }
 0x1e0   : > { %v667_v62 = vmax.f32 %v637_v58, 0.0 }
 0x1e1   : > { %v665_v0 = vmax.f32 %v629_v60, 0.0 }
 0x1e2   : > { %v677_v1 = vpack.c.bf16 %v667_v62, %v666_v61 }
 0x1e3   : > { %v676_v2 = vpack.c.bf16 %v665_v0, %v664_v63  ;;  %v1164_v3 = vpop.f32.mrb[12].mxu1 }
 0x1e4   : > { %v650_v4 = vadd.f32 %v1164_v3, %v1066_v24  ;;  %v641_v5 = vpop.f32.mrb[13].mxu1  ;;  %871 = vmatmul.mubr.bf16.vlgmr.msra.gmra.mrb[16].mxu1 %v677_v1 }
 0x1e5   : > { %v642_v6 = vadd.f32 %v1066_v24, %v641_v5  ;;  %v1165_v7 = vpop.f32.mrb[14].mxu1  ;;  %841 = vmatmul.mubr.bf16.gmra.mrb[24].mxu0 %v674_v52  ;;  %880 = vmatprep.mubr.bf16.mxu1 %v1325_v23 }
 0x1e6   : > { %v653_v8 = vadd.f32 %v1165_v7, %v1066_v24  ;;  %v644_v9 = vpop.f32.mrb[15].mxu1  ;;  %850 = vmatprep.mubr.bf16.mxu0 %v1325_v23  ;;  %v670_v11 = vmax.f32 %v650_v4, 0.0 }
 0x1e7   : > { %v645_v10 = vadd.f32 %v1066_v24, %v644_v9  ;;  %v668_v13 = vmax.f32 %v642_v6, 0.0  ;;  %v1558_v24 = vrot.slane %v696_v20, %v704_v21 }
 0x1e8   : > { %v671_v12 = vmax.f32 %v653_v8, 0.0 }
 0x1e9   : > { %v669_v14 = vmax.f32 %v645_v10, 0.0 }
 0x1ea   : > { %v679_v15 = vpack.c.bf16 %v671_v12, %v670_v11 }
 0x1eb   : > { %v678_v16 = vpack.c.bf16 %v669_v14, %v668_v13 }
 0x1ed   : > { %851 = vmatmul.mubr.bf16.gmra.mrb[28].mxu0 %v675_v51  ;;  %881 = vmatmul.mubr.bf16.gmra.mrb[20].mxu1 %v678_v16 }
 0x1ee   : > { %860 = vmatprep.mubr.bf16.mxu0 %v1325_v23  ;;  %890 = vmatprep.mubr.bf16.mxu1 %v1325_v23 }
 0x1f5   : > { %861 = vmatmul.mubr.bf16.gmra.mrb[32].mxu0 %v676_v2  ;;  %891 = vmatmul.mubr.bf16.gmra.mrb[24].mxu1 %v679_v15 }
 0x2a8   : > { %v822_v25 = vpop.f32.mrb[16].mxu0 }
 0x2a9   : > { %v823_v23 = vadd.f32 %v822_v25, %v1556_v22  ;;  %v824_v26 = vpop.f32.mrb[17].mxu0 }
 0x2aa   : > { %v825_v27 = vadd.f32 %v824_v26, %v1558_v24  ;;  %v826_v28 = vpop.f32.mrb[18].mxu0 }
 0x2ab   : > { %v901_v29 = vmax.f32 %v823_v23, 0.0  ;;  %v827_v30 = vadd.f32 %v826_v28, %v1556_v22  ;;  %v828_v31 = vpop.f32.mrb[19].mxu0 }
 0x2ac   : > { %v902_v32 = vmax.f32 %v825_v27, 0.0  ;;  %v829_v33 = vadd.f32 %v828_v31, %v1558_v24 }
 0x2ad   : > { %933 = vst [vmem:[%s1566_s9] sm:$0xff] %v901_v29  ;;  %v903_v34 = vmax.f32 %v827_v30, 0.0 }
 0x2ae   : > { %934 = vst [vmem:[%s1566_s9 + $0x8] sm:$0xff] %v902_v32  ;;  %v904_v35 = vmax.f32 %v829_v33, 0.0 }
 0x2af   : > { %935 = vst [vmem:[%s1566_s9 + $0x10] sm:$0xff] %v903_v34 }
 0x2b0   : > { %936 = vst [vmem:[%s1566_s9 + $0x18] sm:$0xff] %v904_v35  ;;  %v832_v36 = vpop.f32.mrb[20].mxu0 }
 0x2b1   : > { %v833_v37 = vadd.f32 %v832_v36, %v1556_v22  ;;  %v834_v38 = vpop.f32.mrb[21].mxu0 }
 0x2b2   : > { %v835_v39 = vadd.f32 %v834_v38, %v1558_v24  ;;  %v836_v40 = vpop.f32.mrb[22].mxu0 }
 0x2b3   : > { %v905_v41 = vmax.f32 %v833_v37, 0.0  ;;  %v837_v42 = vadd.f32 %v836_v40, %v1556_v22  ;;  %v838_v43 = vpop.f32.mrb[23].mxu0 }
 0x2b4   : > { %v906_v44 = vmax.f32 %v835_v39, 0.0  ;;  %v839_v45 = vadd.f32 %v838_v43, %v1558_v24 }
 0x2b5   : > { %937 = vst [vmem:[%s1566_s9 + $0x20] sm:$0xff] %v905_v41  ;;  %v907_v46 = vmax.f32 %v837_v42, 0.0 }
 0x2b6   : > { %938 = vst [vmem:[%s1566_s9 + $0x28] sm:$0xff] %v906_v44  ;;  %v908_v47 = vmax.f32 %v839_v45, 0.0 }
 0x2b7   : > { %939 = vst [vmem:[%s1566_s9 + $0x30] sm:$0xff] %v907_v46  ;;  %v872_v48 = vpop.f32.mrb[16].mxu1 }
 0x2b8   : > { %940 = vst [vmem:[%s1566_s9 + $0x38] sm:$0xff] %v908_v47  ;;  %v873_v49 = vadd.f32 %v872_v48, %v1556_v22  ;;  %v842_v50 = vpop.f32.mrb[24].mxu0  ;;  %v874_v51 = vpop.f32.mrb[17].mxu1 }
 0x2b9   : > { %v843_v52 = vadd.f32 %v842_v50, %v1556_v22  ;;  %v875_v53 = vadd.f32 %v874_v51, %v1558_v24  ;;  %v844_v54 = vpop.f32.mrb[25].mxu0  ;;  %v876_v55 = vpop.f32.mrb[18].mxu1 }
 0x2ba   : > { %v921_v56 = vmax.f32 %v873_v49, 0.0  ;;  %v845_v57 = vadd.f32 %v844_v54, %v1558_v24  ;;  %v877_v58 = vadd.f32 %v876_v55, %v1556_v22  ;;  %v846_v59 = vpop.f32.mrb[26].mxu0  ;;  %v878_v60 = vpop.f32.mrb[19].mxu1 }
 0x2bb   : > { %v909_v61 = vmax.f32 %v843_v52, 0.0  ;;  %v922_v62 = vmax.f32 %v875_v53, 0.0  ;;  %v847_v63 = vadd.f32 %v846_v59, %v1556_v22  ;;  %v879_v0 = vadd.f32 %v878_v60, %v1558_v24  ;;  %v848_v1 = vpop.f32.mrb[27].mxu0 }
 0x2bc   : > { %953 = vst [vmem:[%s1566_s9 + $0xa0] sm:$0xff] %v921_v56  ;;  %v910_v2 = vmax.f32 %v845_v57, 0.0  ;;  %v923_v3 = vmax.f32 %v877_v58, 0.0  ;;  %v849_v4 = vadd.f32 %v848_v1, %v1558_v24 }
 0x2bd   : > { %941 = vst [vmem:[%s1566_s9 + $0x40] sm:$0xff] %v909_v61  ;;  %954 = vst [vmem:[%s1566_s9 + $0xa8] sm:$0xff] %v922_v62  ;;  %v911_v5 = vmax.f32 %v847_v63, 0.0  ;;  %v924_v6 = vmax.f32 %v879_v0, 0.0 }
 0x2be   : > { %942 = vst [vmem:[%s1566_s9 + $0x48] sm:$0xff] %v910_v2  ;;  %955 = vst [vmem:[%s1566_s9 + $0xb0] sm:$0xff] %v923_v3  ;;  %v912_v7 = vmax.f32 %v849_v4, 0.0 }
 0x2bf   : > { %943 = vst [vmem:[%s1566_s9 + $0x50] sm:$0xff] %v911_v5  ;;  %956 = vst [vmem:[%s1566_s9 + $0xb8] sm:$0xff] %v924_v6 }
 0x2c0   : > { %944 = vst [vmem:[%s1566_s9 + $0x58] sm:$0xff] %v912_v7  ;;  %v852_v8 = vpop.f32.mrb[28].mxu0  ;;  %v882_v9 = vpop.f32.mrb[20].mxu1 }
 0x2c1   : > { %v853_v10 = vadd.f32 %v852_v8, %v1556_v22  ;;  %v883_v11 = vadd.f32 %v882_v9, %v1556_v22  ;;  %v854_v12 = vpop.f32.mrb[29].mxu0  ;;  %v884_v13 = vpop.f32.mrb[21].mxu1 }
 0x2c2   : > { %v855_v14 = vadd.f32 %v854_v12, %v1558_v24  ;;  %v885_v15 = vadd.f32 %v884_v13, %v1558_v24  ;;  %v856_v16 = vpop.f32.mrb[30].mxu0  ;;  %v886_v17 = vpop.f32.mrb[22].mxu1 }
 0x2c3   : > { %v913_v18 = vmax.f32 %v853_v10, 0.0  ;;  %v925_v19 = vmax.f32 %v883_v11, 0.0  ;;  %v857_v20 = vadd.f32 %v856_v16, %v1556_v22  ;;  %v887_v21 = vadd.f32 %v886_v17, %v1556_v22  ;;  %v858_v25 = vpop.f32.mrb[31].mxu0  ;;  %v888_v23 = vpop.f32.mrb[23].mxu1 }
 0x2c4   : > { %v914_v26 = vmax.f32 %v855_v14, 0.0  ;;  %v926_v27 = vmax.f32 %v885_v15, 0.0  ;;  %v859_v28 = vadd.f32 %v858_v25, %v1558_v24  ;;  %v889_v29 = vadd.f32 %v888_v23, %v1558_v24 }
 0x2c5   : > { %945 = vst [vmem:[%s1566_s9 + $0x60] sm:$0xff] %v913_v18  ;;  %957 = vst [vmem:[%s1566_s9 + $0xc0] sm:$0xff] %v925_v19  ;;  %v915_v30 = vmax.f32 %v857_v20, 0.0  ;;  %v927_v31 = vmax.f32 %v887_v21, 0.0 }
 0x2c6   : > { %946 = vst [vmem:[%s1566_s9 + $0x68] sm:$0xff] %v914_v26  ;;  %958 = vst [vmem:[%s1566_s9 + $0xc8] sm:$0xff] %v926_v27  ;;  %v916_v32 = vmax.f32 %v859_v28, 0.0  ;;  %v928_v33 = vmax.f32 %v889_v29, 0.0 }
 0x2c7   : > { %947 = vst [vmem:[%s1566_s9 + $0x70] sm:$0xff] %v915_v30  ;;  %959 = vst [vmem:[%s1566_s9 + $0xd0] sm:$0xff] %v927_v31 }
 0x2c8   : > { %948 = vst [vmem:[%s1566_s9 + $0x78] sm:$0xff] %v916_v32  ;;  %960 = vst [vmem:[%s1566_s9 + $0xd8] sm:$0xff] %v928_v33  ;;  %v862_v34 = vpop.f32.mrb[32].mxu0  ;;  %v892_v35 = vpop.f32.mrb[24].mxu1 }
 0x2c9   : > { %v863_v36 = vadd.f32 %v862_v34, %v1556_v22  ;;  %v893_v37 = vadd.f32 %v892_v35, %v1556_v22  ;;  %v864_v38 = vpop.f32.mrb[33].mxu0  ;;  %v894_v39 = vpop.f32.mrb[25].mxu1 }
 0x2ca   : > { %v865_v40 = vadd.f32 %v864_v38, %v1558_v24  ;;  %v895_v41 = vadd.f32 %v894_v39, %v1558_v24  ;;  %v866_v42 = vpop.f32.mrb[34].mxu0  ;;  %v896_v43 = vpop.f32.mrb[26].mxu1 }
 0x2cb   : > { %v917_v44 = vmax.f32 %v863_v36, 0.0  ;;  %v929_v45 = vmax.f32 %v893_v37, 0.0  ;;  %v867_v46 = vadd.f32 %v866_v42, %v1556_v22  ;;  %v897_v47 = vadd.f32 %v896_v43, %v1556_v22  ;;  %v868_v48 = vpop.f32.mrb[35].mxu0  ;;  %v898_v49 = vpop.f32.mrb[27].mxu1 }
 0x2cc   : > { %v918_v50 = vmax.f32 %v865_v40, 0.0  ;;  %v930_v51 = vmax.f32 %v895_v41, 0.0  ;;  %v869_v52 = vadd.f32 %v868_v48, %v1558_v24  ;;  %v899_v53 = vadd.f32 %v898_v49, %v1558_v24 }
 0x2cd   : > { %949 = vst [vmem:[%s1566_s9 + $0x80] sm:$0xff] %v917_v44  ;;  %961 = vst [vmem:[%s1566_s9 + $0xe0] sm:$0xff] %v929_v45  ;;  %v919_v54 = vmax.f32 %v867_v46, 0.0  ;;  %v931_v55 = vmax.f32 %v897_v47, 0.0 }
 0x2ce   : > { %950 = vst [vmem:[%s1566_s9 + $0x88] sm:$0xff] %v918_v50  ;;  %962 = vst [vmem:[%s1566_s9 + $0xe8] sm:$0xff] %v930_v51  ;;  %v920_v22 = vmax.f32 %v869_v52, 0.0  ;;  %v932_v56 = vmax.f32 %v899_v53, 0.0 }
 0x2cf   : > { %951 = vst [vmem:[%s1566_s9 + $0x90] sm:$0xff] %v919_v54  ;;  %963 = vst [vmem:[%s1566_s9 + $0xf0] sm:$0xff] %v931_v55 }
 0x2d0   : > { %952 = vst [vmem:[%s1566_s9 + $0x98] sm:$0xff] %v920_v22  ;;  %964 = vst [vmem:[%s1566_s9 + $0xf8] sm:$0xff] %v932_v56 }
 0x2d1   : > { %1274 = shalt.err (!%p1271_p3)
}
 0x2d2   : > { %s1275_s22 = scalar_lea.hbm %s1627_s16, 4096  ;;  %s1279_s8 = scalar_lea.hbm %s1687_s7, 8192 }
 0x2d3   : > { %p1276_p4 = scmp.ne.s32.totalorder %s1627_s16, %s1275_s22  ;;  %p1280_p9 = scmp.lt.u32.totalorder %s1627_s16, %s1687_s7 }
 0x2d4   : > { %p1281_p10 = scmp.lt.u32.totalorder %s1279_s8, %s1275_s22  ;;  %p1283_p12 = scmp.lt.u32.totalorder %s1275_s22, %s1627_s16 }
 0x2d5   : > { %p1277_p7 = pnand %p1276_p4, %p1407_p5 }
 0x2d6   : > { %p1282_p11 = por %p1281_p10, %p1280_p9 }
 0x2d7   : > { %p1278_p8 = pneg %p1277_p7 }
 0x2d8   : > { %p1284_p13 = por %p1283_p12, %p1282_p11 }
 0x2da   : > { %p1285_p0 = pnand %p1284_p13, %p1278_p8 }
 0x2dc   : > { %1288 = shalt.err (!%p1285_p0)
}
 0x2dd   : > { %s1327_s28 = smov 256   ;;  %s1328_s15 = smov 16  }
 0x2de   : > { %1183 = dma.vmem_to_hbm [thread:$0]  (%p1407_p5), %s1629_s14, 4096, %s1627_s16, %s1639_s17, %s1327_s28, %s1327_s28, %s1328_s15  }
 0x2df PF: > { %p1189_p1 = scmp.ge.s32.totalorder %s1323_s27, 2  ;;  %s995_s18 = sand.u32 1, %s1311_s24  }
 0x2e0   : > { %s996_s19 = scalar_lea.sflag [#allocation3], %s995_s18 }
 0x2e1   : > { %p1186_p2 = pnand %p1189_p1, %p1411_p6 }
 0x2e3   : > { %1306 = dma.done.wait (!%p1186_p2), %s996_s19, 4096  }
 0x2e4   : > { %1308 = vsyncadd (!%p1186_p2), %s996_s19, 4294963200  ;;  %p17_p3 = scmp.ge.s32.totalorder %s1394_s30, 4   ;;  %s1690_s24 = smov %s1315_s25 }
 0x2e5   : > { %s1691_s25 = smov %s1319_s26  ;;  %s1692_s26 = smov %s1405_s10 }
 0x2e6   : > { %s1693_s27 = smov %s1394_s30  ;;  %19 = sbr.rel (!%p17_p3) target bundleno = 3 (0x3), region = 83 }
 0x2ed   :  { %1001 = vsyncpa [#allocation3], 1 }
 0x2ee   :  { %1003 = vsyncpa [#allocation3 + $0x1], 1 }

</bundles_post_ra>
